<compile_context>
chip_gen: v6e
topology: v6e:2x2x1
jax: 0.10.0
libtpu: 0.0.40
codegen_flags: <defaults>
</compile_context>

<pallas_src>
import jax
import jax.numpy as jnp
from jax.experimental import pallas as pl
from jax.experimental.pallas import tpu as pltpu

NUM_LETTERS = 26
TILE_W = 1024  # lane tile (multiple of 128); tiny VMEM footprint on v5e/v6e/v7x


def _invalid_word_kernel(invalid_bits_ref, probs_ref, word_bits_ref, out_ref):
    inv_bits = invalid_bits_ref[0]                     # scalar int32 from SMEM
    probs = probs_ref[...]                             # (1, TILE_W) f32
    bits = word_bits_ref[...]                          # (1, TILE_W) i32
    keep = (bits & inv_bits) == 0                      # no invalid letter in word
    out_ref[...] = jnp.where(keep, probs, jnp.zeros_like(probs))


def make_letter_filters(words):
    """(26, W) f32: 0 where letter occurs in word, else 1 (mirrors __init__)."""
    letters = jnp.asarray(words, dtype=jnp.int32)                        # (W, 5)
    onehot = jax.nn.one_hot(letters, NUM_LETTERS, dtype=jnp.float32)     # (W, 5, 26)
    present = jnp.clip(jnp.sum(onehot, axis=1), 0.0, 1.0)                # (W, 26)
    return (1.0 - present).T                                             # (26, W)


def pack_word_bits(words):
    """(W,) int32: bit l set iff letter l occurs in the word."""
    letters = jnp.asarray(words, dtype=jnp.int32)                        # (W, 5)
    present = (jax.nn.one_hot(letters, NUM_LETTERS, dtype=jnp.int32)
               .sum(axis=1) > 0).astype(jnp.int32)                       # (W, 26)
    weights = jnp.left_shift(jnp.int32(1),
                             jnp.arange(NUM_LETTERS, dtype=jnp.int32))   # (26,)
    return jnp.sum(present * weights, axis=1).astype(jnp.int32)          # (W,)


def pack_invalid_bits(invalid_letters):
    """(1,) int32 bitmask: bit l set iff letter l is flagged invalid."""
    flags = (jnp.asarray(invalid_letters) != 0).astype(jnp.int32)        # (26,)
    weights = jnp.left_shift(jnp.int32(1),
                             jnp.arange(NUM_LETTERS, dtype=jnp.int32))
    return jnp.sum(flags * weights).astype(jnp.int32).reshape(1)


def invalid_word_processor(probs, invalid_letters, word_bits):
    """probs: (W,) f32; invalid_letters: (26,) flags; word_bits: (W,) int32."""
    num_words = probs.shape[0]
    w_pad = ((num_words + TILE_W - 1) // TILE_W) * TILE_W
    pad = w_pad - num_words

    probs2d = jnp.pad(probs.astype(jnp.float32), (0, pad)).reshape(1, w_pad)
    bits2d = jnp.pad(word_bits.astype(jnp.int32), (0, pad)).reshape(1, w_pad)
    inv_bits = pack_invalid_bits(invalid_letters)                        # (1,) i32

    out = pl.pallas_call(
        _invalid_word_kernel,
        out_shape=jax.ShapeDtypeStruct((1, w_pad), jnp.float32),
        grid_spec=pltpu.PrefetchScalarGridSpec(
            num_scalar_prefetch=1,
            grid=(w_pad // TILE_W,),
            in_specs=[
                pl.BlockSpec((1, TILE_W), lambda i, inv: (0, i)),   # probs
                pl.BlockSpec((1, TILE_W), lambda i, inv: (0, i)),   # word bits
            ],
            out_specs=pl.BlockSpec((1, TILE_W), lambda i, inv: (0, i)),
        ),
        compiler_params=pltpu.CompilerParams(
            dimension_semantics=("parallel",)),
        cost_estimate=pl.CostEstimate(
            flops=2 * num_words, transcendentals=0,
            bytes_accessed=12 * num_words),
    )(inv_bits, probs2d, bits2d)
    return out.reshape(w_pad)[:num_words]


def reference(probs, invalid_letters, letter_filters):
    mult = jnp.where(invalid_letters[:, None] > 0,
                     letter_filters, jnp.ones_like(letter_filters))
    return probs * jnp.prod(mult, axis=0)


if __name__ == "__main__":
    key = jax.random.PRNGKey(0)
    k_words, k_probs, k_inv = jax.random.split(key, 3)

    num_words = 333  # not a multiple of 128: exercises padding/slicing path
    word_letters = jax.random.randint(k_words, (num_words, 5), 0, NUM_LETTERS)
    words = [tuple(int(l) for l in row) for row in jax.device_get(word_letters)]

    letter_filters = make_letter_filters(words)                        # (26, W)
    word_bits = pack_word_bits(words)                                  # (W,) i32
    probs = jax.random.uniform(k_probs, (num_words,), jnp.float32)     # (W,)
    invalid_letters = jax.random.bernoulli(
        k_inv, 0.3, (NUM_LETTERS,)).astype(jnp.int32)

    out = invalid_word_processor(probs, invalid_letters, word_bits)
    out = jax.block_until_ready(out)

    ref = reference(probs, invalid_letters.astype(jnp.float32), letter_filters)
    assert out.shape == probs.shape and out.dtype == jnp.float32
    assert jnp.array_equal(out, ref), "mismatch vs reference"

    print("KERNEL_OK")
</pallas_src>

<mosaic_0001>
module attributes {stable_mosaic.version = 11 : i64} {
  func.func @_invalid_word_kernel(%arg0: i32, %arg1: memref<1xi32, #tpu.memory_space<smem>>, %arg2: memref<1x1024xf32, #tpu.memory_space<vmem>>, %arg3: memref<1x1024xi32, #tpu.memory_space<vmem>>, %arg4: memref<1x1024xf32, #tpu.memory_space<vmem>>) attributes {dimension_semantics = [#tpu.dimension_semantics<parallel>], iteration_bounds = array<i64: 1>, scalar_prefetch = 1 : i64, scratch_operands = 0 : i64, tpu.core_type = #tpu.core_type<tc>, window_params = [{transform_indices = @transform_0, window_bounds = array<i64: 1, 1024>}, {transform_indices = @transform_1, window_bounds = array<i64: 1, 1024>}, {transform_indices = @transform_2, window_bounds = array<i64: 1, 1024>}]} {
    %c0 = arith.constant 0 : index
    %0 = memref.load %arg1[%c0] : memref<1xi32, #tpu.memory_space<smem>>
    %c0_0 = arith.constant 0 : index
    %c0_1 = arith.constant 0 : index
    %1 = vector.load %arg2[%c0_0, %c0_1] : memref<1x1024xf32, #tpu.memory_space<vmem>>, vector<1x1024xf32>
    %c0_2 = arith.constant 0 : index
    %c0_3 = arith.constant 0 : index
    %2 = vector.load %arg3[%c0_2, %c0_3] : memref<1x1024xi32, #tpu.memory_space<vmem>>, vector<1x1024xi32>
    %3 = vector.broadcast %0 : i32 to vector<1x1024xi32>
    %4 = arith.andi %2, %3 : vector<1x1024xi32>
    %c0_i32 = arith.constant 0 : i32
    %5 = vector.broadcast %c0_i32 : i32 to vector<1x1024xi32>
    %6 = arith.cmpi eq, %4, %5 : vector<1x1024xi32>
    %cst = arith.constant 0.000000e+00 : f32
    %7 = vector.broadcast %cst : f32 to vector<1x1024xf32>
    %8 = arith.select %6, %1, %7 : vector<1x1024xi1>, vector<1x1024xf32>
    %c0_4 = arith.constant 0 : index
    %c0_5 = arith.constant 0 : index
    %9 = vector.load %arg4[%c0_4, %c0_5] : memref<1x1024xf32, #tpu.memory_space<vmem>>, vector<1x1024xf32>
    tpu.vector_store %arg4[%c0_4, %c0_5], %8 {strides = array<i32>} : memref<1x1024xf32, #tpu.memory_space<vmem>>, vector<1x1024xf32>,
    return
  }
  func.func @transform_0(%arg0: i32, %arg1: memref<1xi32, #tpu.memory_space<smem>>) -> (i32, i32) {
    %c0_i32 = arith.constant 0 : i32
    %c0_i32_0 = arith.constant 0 : i32
    return %c0_i32, %arg0 : i32, i32
  }
  func.func @transform_1(%arg0: i32, %arg1: memref<1xi32, #tpu.memory_space<smem>>) -> (i32, i32) {
    %c0_i32 = arith.constant 0 : i32
    %c0_i32_0 = arith.constant 0 : i32
    return %c0_i32, %arg0 : i32, i32
  }
  func.func @transform_2(%arg0: i32, %arg1: memref<1xi32, #tpu.memory_space<smem>>) -> (i32, i32) {
    %c0_i32 = arith.constant 0 : i32
    %c0_i32_0 = arith.constant 0 : i32
    return %c0_i32, %arg0 : i32, i32
  }
}

</mosaic_0001>

<bundles_post_ra>
// kernel: tpu_custom_call.1
= control target key start
LH: loop header
LB: loop body
LE: loop exit
PB: predicated region body
PF: predicated region fallthrough
CT: control target
= control target key end

     0   :  { %9 = vsyncpa [#allocation5], 0  ;;  %s166_s0 = inlined_call_operand.<no memory space> [shape: s32[1], index: 0, kind: input, shape index: {}]   ;;  %s167_s1 = inlined_call_operand.hbm [shape: f32[1,1024], index: 1, kind: input, shape index: {}]   ;;  %s168_s2 = inlined_call_operand.hbm [shape: s32[1,1024], index: 2, kind: input, shape index: {}]   ;;  %s169_s3 = inlined_call_operand.hbm [shape: f32[1,1024], index: 3, kind: output, shape index: {}]  }
   0x1   :  { %10 = vsyncpa [#allocation8], 0 }
   0x2   :  { %11 = vsyncpa [#allocation6], 0  ;;  %s131_s12 = smov [#allocation4]   ;;  %s132_s14 = smov [#allocation7]  }
   0x3   :  { %s18_s13 = sshll.u32 %s131_s12, 4  ;;  %s28_s15 = sshll.u32 %s132_s14, 4  ;;  %s19_s13 = int_to_ptr.vmem [resolvable:$true] %s18_s13  ;;  %s29_s15 = int_to_ptr.vmem [resolvable:$true] %s28_s15 }
   0x4   :  { %s73_s16 = scalar_lea.vmem %s19_s13, 128  ;;  %p78_p1 = scmp.lt.s32.totalorder %s19_s13, %s19_s13 }
   0x5   :  { %p74_p0 = scmp.ne.s32.totalorder %s19_s13, %s73_s16  ;;  %p79_p2 = scmp.lt.s32.totalorder %s73_s16, %s73_s16 }
   0x7   :  { %p80_p3 = por %p79_p2, %p78_p1 }
   0x9   :  { %p81_p4 = pnand %p80_p3, %p74_p0 }
   0xb   :  { %84 = shalt.err (!%p81_p4)
}
   0xc   :  { %21 = dma.hbm_to_vmem [thread:$0]  %s167_s1, 128, %s19_s13, [#allocation5]  }
   0xd   :  { %s93_s19 = scalar_lea.vmem %s29_s15, 128  ;;  %p98_p6 = scmp.lt.s32.totalorder %s29_s15, %s29_s15 }
   0xe   :  { %p94_p5 = scmp.ne.s32.totalorder %s29_s15, %s93_s19  ;;  %p99_p7 = scmp.lt.s32.totalorder %s93_s19, %s93_s19 }
  0x10   :  { %p100_p8 = por %p99_p7, %p98_p6 }
  0x12   :  { %p101_p9 = pnand %p100_p8, %p94_p5 }
  0x14   :  { %104 = shalt.err (!%p101_p9)
}
  0x15   :  { %31 = dma.hbm_to_vmem [thread:$0]  %s168_s2, 128, %s29_s15, [#allocation8]  }
  0x16   :  { %125 = dma.done.wait [#allocation5], 128  }
  0x17   :  { %126 = vsyncadd [#allocation5], 4294967168 }
  0x18   :  { %127 = dma.done.wait [#allocation8], 128  }
  0x19   :  { %128 = vsyncadd [#allocation8], 4294967168  ;;  %v41_v0 = vstv %s166_s0  ;;  %v40_v1 = vld [vmem:[#allocation7] sm:$0xff]  ;;  %s133_s1 = smov [#allocation9]   ;;  %v39_v2 = vld [vmem:[#allocation4] sm:$0xff] }
  0x1a   :  { %s52_s24 = sshll.u32 %s133_s1, 4  ;;  %v42_v3 = vand.u32 %v41_v0, %v40_v1  ;;  %s53_s24 = int_to_ptr.vmem [resolvable:$true] %s52_s24 }
  0x1b   :  { %s105_s25 = scalar_lea.vmem %s53_s24, 128  ;;  %p110_p11 = scmp.lt.s32.totalorder %s53_s24, %s53_s24 }
  0x1c   :  { %vm43_vm0 = vcmp.eq.s32.totalorder %v42_v3, 0  ;;  %p106_p10 = scmp.ne.s32.totalorder %s53_s24, %s105_s25  ;;  %p111_p12 = scmp.lt.s32.totalorder %s105_s25, %s105_s25 }
  0x1d   :  { %v44_v4 = vsel %vm43_vm0, %v39_v2, 0.0 }
  0x1e   :  { %45 = vst [vmem:[#allocation9] sm:$0xff] %v44_v4  ;;  %p112_p13 = por %p111_p12, %p110_p11 }
  0x20   :  { %p113_p0 = pnand %p112_p13, %p106_p10 }
  0x22   :  { %116 = shalt.err (!%p113_p0)
}
  0x23   :  { %55 = dma.vmem_to_hbm [thread:$0]  %s53_s24, 128, %s169_s3, [#allocation6]  }
  0x24   :  { %129 = dma.done.wait [#allocation6], 128  }
  0x25   :  { %130 = vsyncadd [#allocation6], 4294967168 }
  0x26   :  { %59 = vsyncpa [#allocation5], 1 }
  0x27   :  { %60 = vsyncpa [#allocation8], 1 }
  0x28   :  { %61 = vsyncpa [#allocation6], 1 }

</bundles_post_ra>
